<compile_context>
chip_gen: v5e
topology: v5e:2x2
jax: 0.10.0
libtpu: 0.0.40
codegen_flags: <defaults>
</compile_context>

<pallas_src>
import functools

import jax
import jax.numpy as jnp
from jax.experimental import pallas as pl
from jax.experimental.pallas import tpu as pltpu


def _round_up(v, m):
    return ((v + m - 1) // m) * m


def _mse_per_class_kernel(x_ref, lab_ref, sum_ref, cnt_ref, sum_acc, cnt_acc,
                          *, n_total, tile_n, c, c_pad):
    i = pl.program_id(0)

    @pl.when(i == 0)
    def _init():
        sum_acc[...] = jnp.zeros_like(sum_acc)
        cnt_acc[...] = jnp.zeros_like(cnt_acc)

    x = x_ref[...].astype(jnp.float32)          # [tile_n, c]  (upcast in-kernel)
    labels = lab_ref[...]                       # [tile_n, 1]  int32

    # mask rows of the (padded) last tile
    row_ids = i * tile_n + jax.lax.broadcasted_iota(jnp.int32, (tile_n, 1), 0)
    valid = row_ids < n_total                   # [tile_n, 1] bool

    # per-sample MSE vs the one-hot target: mean_c (x - onehot)^2
    class_ids = jax.lax.broadcasted_iota(jnp.int32, (tile_n, c), 1)
    sel = class_ids == labels                   # [tile_n, c] bool
    diff = x - jnp.where(sel, 1.0, 0.0)
    loss = jnp.sum(diff * diff, axis=1, keepdims=True) * (1.0 / c)   # [tile_n, 1]
    loss = jnp.where(valid, loss, 0.0)          # zero padded rows (kills any NaN garbage)

    # lane-padded one-hot; padded rows and lanes >= c are all zero
    if c_pad == c:
        one_hot = jnp.where(sel & valid, 1.0, 0.0)
    else:
        class_ids_p = jax.lax.broadcasted_iota(jnp.int32, (tile_n, c_pad), 1)
        one_hot = jnp.where((class_ids_p == labels) & valid, 1.0, 0.0)

    # group-by-class scatter-add on the MXU (keeps the XLU free for the
    # lane-axis reduction above)
    ones_row = jnp.ones((1, tile_n), jnp.float32)
    cnt_acc[...] += jnp.dot(ones_row, one_hot,
                            preferred_element_type=jnp.float32)
    sum_acc[...] += jnp.dot(ones_row, loss * one_hot,
                            preferred_element_type=jnp.float32)

    @pl.when(i == pl.num_programs(0) - 1)
    def _finalize():
        sum_ref[...] = sum_acc[:, :c]
        cnt_ref[...] = cnt_acc[:, :c]


def mse_loss_per_class(inputs, labels, *, tile_n=None):
    """inputs: [N, C] float; labels: [N] int in [0, C).
    Returns (sum_by_class, label_counts), both [C] float32."""
    n, c = inputs.shape
    c_pad = max(_round_up(c, 128), 128)

    if tile_n is None:
        # keep the double-buffered x tile well under the scoped VMEM default on
        # every generation (v5e 16 MiB): ~4 MiB per x buffer.
        budget = 4 * 1024 * 1024
        tile_n = budget // max(1, c * inputs.dtype.itemsize)
        tile_n = max(8, min(1024, tile_n))
    tile_n = _round_up(min(tile_n, _round_up(n, 8)), 8)

    num_tiles = pl.cdiv(n, tile_n)
    lab = labels.astype(jnp.int32).reshape(n, 1)

    kernel = functools.partial(
        _mse_per_class_kernel, n_total=n, tile_n=tile_n, c=c, c_pad=c_pad)

    sum_by_class, counts = pl.pallas_call(
        kernel,
        out_shape=(
            jax.ShapeDtypeStruct((1, c), jnp.float32),
            jax.ShapeDtypeStruct((1, c), jnp.float32),
        ),
        grid=(num_tiles,),
        in_specs=[
            pl.BlockSpec((tile_n, c), lambda i: (i, 0)),   # x, original dtype
            pl.BlockSpec((tile_n, 1), lambda i: (i, 0)),   # labels
        ],
        out_specs=(
            pl.BlockSpec((1, c), lambda i: (0, 0)),        # resident accumulator outputs
            pl.BlockSpec((1, c), lambda i: (0, 0)),
        ),
        scratch_shapes=[
            pltpu.VMEM((1, c_pad), jnp.float32),   # loss-sum accumulator (lane-padded)
            pltpu.VMEM((1, c_pad), jnp.float32),   # count accumulator (lane-padded)
        ],
        compiler_params=pltpu.CompilerParams(
            dimension_semantics=("arbitrary",)),   # sequential: scratch carries state
    )(inputs, lab)
    return sum_by_class[0], counts[0]


if __name__ == "__main__":
    key = jax.random.PRNGKey(0)
    k_x, k_y = jax.random.split(key)

    # small shapes; exercises multi-tile grid, padded last tile, and C < 128
    N, C = 80, 10
    inputs = jax.random.normal(k_x, (N, C), dtype=jnp.float32)
    labels = jax.random.randint(k_y, (N,), 0, C, dtype=jnp.int32)

    sum_by_class, label_counts = mse_loss_per_class(inputs, labels, tile_n=32)
    jax.block_until_ready((sum_by_class, label_counts))

    # plain-JAX reference mirroring the PyTorch module
    one_hot = jax.nn.one_hot(labels, C, dtype=jnp.float32)
    losses = jnp.mean((inputs - one_hot) ** 2, axis=1)
    sum_ref = jnp.zeros((C,), jnp.float32).at[labels].add(losses)
    cnt_ref = jnp.zeros((C,), jnp.float32).at[labels].add(1.0)

    assert jnp.allclose(sum_by_class, sum_ref, atol=1e-5, rtol=1e-5)
    assert jnp.allclose(label_counts, cnt_ref)

    print("KERNEL_OK")
</pallas_src>

<mosaic_0001>
module attributes {stable_mosaic.version = 11 : i64} {
  func.func @_mse_per_class_kernel(%arg0: i32, %arg1: memref<32x10xf32, #tpu.memory_space<vmem>>, %arg2: memref<32x1xi32, #tpu.memory_space<vmem>>, %arg3: memref<1x10xf32, #tpu.memory_space<vmem>>, %arg4: memref<1x10xf32, #tpu.memory_space<vmem>>, %arg5: memref<1x128xf32, #tpu.memory_space<vmem>>, %arg6: memref<1x128xf32, #tpu.memory_space<vmem>>) attributes {dimension_semantics = [#tpu.dimension_semantics<arbitrary>], iteration_bounds = array<i64: 3>, scalar_prefetch = 0 : i64, scratch_operands = 2 : i64, tpu.core_type = #tpu.core_type<tc>, window_params = [{transform_indices = @transform_0, window_bounds = array<i64: 32, 10>}, {transform_indices = @transform_1, window_bounds = array<i64: 32, 1>}, {pipeline_mode = #tpu.pipeline_mode<synchronous>, transform_indices = @transform_2, window_bounds = array<i64: 1, 10>}, {pipeline_mode = #tpu.pipeline_mode<synchronous>, transform_indices = @transform_3, window_bounds = array<i64: 1, 10>}]} {
    %c0_i32 = arith.constant 0 : i32
    %0 = arith.cmpi eq, %arg0, %c0_i32 : i32
    %1 = arith.extui %0 : i1 to i32
    %c0_i32_0 = arith.constant 0 : i32
    %2 = arith.cmpi ne, %1, %c0_i32_0 : i32
    scf.if %2 {
      %cst_22 = arith.constant 0.000000e+00 : f32
      %47 = vector.broadcast %cst_22 : f32 to vector<1x128xf32>
      %c0_23 = arith.constant 0 : index
      %c0_24 = arith.constant 0 : index
      %48 = vector.load %arg5[%c0_23, %c0_24] : memref<1x128xf32, #tpu.memory_space<vmem>>, vector<1x128xf32>
      tpu.vector_store %arg5[%c0_23, %c0_24], %47 {strides = array<i32>} : memref<1x128xf32, #tpu.memory_space<vmem>>, vector<1x128xf32>,
      %cst_25 = arith.constant 0.000000e+00 : f32
      %49 = vector.broadcast %cst_25 : f32 to vector<1x128xf32>
      %c0_26 = arith.constant 0 : index
      %c0_27 = arith.constant 0 : index
      %50 = vector.load %arg6[%c0_26, %c0_27] : memref<1x128xf32, #tpu.memory_space<vmem>>, vector<1x128xf32>
      tpu.vector_store %arg6[%c0_26, %c0_27], %49 {strides = array<i32>} : memref<1x128xf32, #tpu.memory_space<vmem>>, vector<1x128xf32>,
    } else {
    }
    %c0 = arith.constant 0 : index
    %c0_1 = arith.constant 0 : index
    %3 = vector.load %arg1[%c0, %c0_1] : memref<32x10xf32, #tpu.memory_space<vmem>>, vector<32x10xf32>
    %c0_2 = arith.constant 0 : index
    %c0_3 = arith.constant 0 : index
    %4 = vector.load %arg2[%c0_2, %c0_3] : memref<32x1xi32, #tpu.memory_space<vmem>>, vector<32x1xi32>
    %c32_i32 = arith.constant 32 : i32
    %5 = arith.muli %arg0, %c32_i32 : i32
    %6 = tpu.iota {dimensions = array<i32: 0>} : vector<32x1xi32>
    %7 = vector.broadcast %5 : i32 to vector<32x1xi32>
    %8 = arith.addi %7, %6 : vector<32x1xi32>
    %c80_i32 = arith.constant 80 : i32
    %9 = vector.broadcast %c80_i32 : i32 to vector<32x1xi32>
    %10 = arith.cmpi slt, %8, %9 : vector<32x1xi32>
    %11 = tpu.iota {dimensions = array<i32: 1>} : vector<32x10xi32>
    %12 = vector.broadcast %4 : vector<32x1xi32> to vector<32x10xi32>
    %13 = arith.cmpi eq, %11, %12 : vector<32x10xi32>
    %cst = arith.constant 1.000000e+00 : f32
    %cst_4 = arith.constant 0.000000e+00 : f32
    %14 = vector.broadcast %cst : f32 to vector<32x10xf32>
    %15 = vector.broadcast %cst_4 : f32 to vector<32x10xf32>
    %16 = arith.select %13, %14, %15 : vector<32x10xi1>, vector<32x10xf32>
    %17 = arith.subf %3, %16 : vector<32x10xf32>
    %18 = arith.mulf %17, %17 : vector<32x10xf32>
    %cst_5 = arith.constant dense<0.000000e+00> : vector<32xf32>
    %19 = vector.multi_reduction <add>, %18, %cst_5 [1] : vector<32x10xf32> to vector<32xf32>
    %20 = vector.shape_cast %19 : vector<32xf32> to vector<32x1xf32>
    %cst_6 = arith.constant 1.000000e-01 : f32
    %21 = vector.broadcast %cst_6 : f32 to vector<32x1xf32>
    %22 = arith.mulf %20, %21 : vector<32x1xf32>
    %cst_7 = arith.constant 0.000000e+00 : f32
    %23 = vector.broadcast %cst_7 : f32 to vector<32x1xf32>
    %24 = arith.select %10, %22, %23 : vector<32x1xi1>, vector<32x1xf32>
    %25 = tpu.iota {dimensions = array<i32: 1>} : vector<32x128xi32>
    %26 = vector.broadcast %4 : vector<32x1xi32> to vector<32x128xi32>
    %27 = arith.cmpi eq, %25, %26 : vector<32x128xi32>
    %28 = vector.broadcast %10 : vector<32x1xi1> to vector<32x128xi1>
    %29 = arith.andi %27, %28 : vector<32x128xi1>
    %cst_8 = arith.constant 1.000000e+00 : f32
    %cst_9 = arith.constant 0.000000e+00 : f32
    %30 = vector.broadcast %cst_8 : f32 to vector<32x128xf32>
    %31 = vector.broadcast %cst_9 : f32 to vector<32x128xf32>
    %32 = arith.select %29, %30, %31 : vector<32x128xi1>, vector<32x128xf32>
    %cst_10 = arith.constant 1.000000e+00 : f32
    %33 = vector.broadcast %cst_10 : f32 to vector<1x32xf32>
    %c0_11 = arith.constant 0 : index
    %c0_12 = arith.constant 0 : index
    %34 = vector.load %arg6[%c0_11, %c0_12] : memref<1x128xf32, #tpu.memory_space<vmem>>, vector<1x128xf32>
    %cst_13 = arith.constant dense<0.000000e+00> : vector<1x128xf32>
    %35 = tpu.matmul %33, %32, %cst_13 {dimension_numbers = #tpu.dot_dimension_numbers<[1], [0], [0], [1], [0, 0, 1, 1], [], []>} : vector<1x32xf32>, vector<32x128xf32>, vector<1x128xf32> -> vector<1x128xf32>
    %36 = arith.addf %34, %35 : vector<1x128xf32>
    %c0_14 = arith.constant 0 : index
    %c0_15 = arith.constant 0 : index
    %37 = vector.load %arg6[%c0_14, %c0_15] : memref<1x128xf32, #tpu.memory_space<vmem>>, vector<1x128xf32>
    tpu.vector_store %arg6[%c0_14, %c0_15], %36 {strides = array<i32>} : memref<1x128xf32, #tpu.memory_space<vmem>>, vector<1x128xf32>,
    %c0_16 = arith.constant 0 : index
    %c0_17 = arith.constant 0 : index
    %38 = vector.load %arg5[%c0_16, %c0_17] : memref<1x128xf32, #tpu.memory_space<vmem>>, vector<1x128xf32>
    %39 = vector.broadcast %24 : vector<32x1xf32> to vector<32x128xf32>
    %40 = arith.mulf %39, %32 : vector<32x128xf32>
    %cst_18 = arith.constant dense<0.000000e+00> : vector<1x128xf32>
    %41 = tpu.matmul %33, %40, %cst_18 {dimension_numbers = #tpu.dot_dimension_numbers<[1], [0], [0], [1], [0, 0, 1, 1], [], []>} : vector<1x32xf32>, vector<32x128xf32>, vector<1x128xf32> -> vector<1x128xf32>
    %42 = arith.addf %38, %41 : vector<1x128xf32>
    %c0_19 = arith.constant 0 : index
    %c0_20 = arith.constant 0 : index
    %43 = vector.load %arg5[%c0_19, %c0_20] : memref<1x128xf32, #tpu.memory_space<vmem>>, vector<1x128xf32>
    tpu.vector_store %arg5[%c0_19, %c0_20], %42 {strides = array<i32>} : memref<1x128xf32, #tpu.memory_space<vmem>>, vector<1x128xf32>,
    %c2_i32 = arith.constant 2 : i32
    %44 = arith.cmpi eq, %arg0, %c2_i32 : i32
    %45 = arith.extui %44 : i1 to i32
    %c0_i32_21 = arith.constant 0 : i32
    %46 = arith.cmpi ne, %45, %c0_i32_21 : i32
    scf.if %46 {
      %c0_22 = arith.constant 0 : index
      %c0_23 = arith.constant 0 : index
      %47 = vector.load %arg5[%c0_22, %c0_23] : memref<1x128xf32, #tpu.memory_space<vmem>>, vector<1x10xf32>
      %c0_24 = arith.constant 0 : index
      %c0_25 = arith.constant 0 : index
      %48 = vector.load %arg3[%c0_24, %c0_25] : memref<1x10xf32, #tpu.memory_space<vmem>>, vector<1x10xf32>
      tpu.vector_store %arg3[%c0_24, %c0_25], %47 {strides = array<i32>} : memref<1x10xf32, #tpu.memory_space<vmem>>, vector<1x10xf32>,
      %c0_26 = arith.constant 0 : index
      %c0_27 = arith.constant 0 : index
      %49 = vector.load %arg6[%c0_26, %c0_27] : memref<1x128xf32, #tpu.memory_space<vmem>>, vector<1x10xf32>
      %c0_28 = arith.constant 0 : index
      %c0_29 = arith.constant 0 : index
      %50 = vector.load %arg4[%c0_28, %c0_29] : memref<1x10xf32, #tpu.memory_space<vmem>>, vector<1x10xf32>
      tpu.vector_store %arg4[%c0_28, %c0_29], %49 {strides = array<i32>} : memref<1x10xf32, #tpu.memory_space<vmem>>, vector<1x10xf32>,
    } else {
    }
    return
  }
  func.func @transform_0(%arg0: i32) -> (i32, i32) {
    %c0_i32 = arith.constant 0 : i32
    %c0_i32_0 = arith.constant 0 : i32
    return %arg0, %c0_i32 : i32, i32
  }
  func.func @transform_1(%arg0: i32) -> (i32, i32) {
    %c0_i32 = arith.constant 0 : i32
    %c0_i32_0 = arith.constant 0 : i32
    return %arg0, %c0_i32 : i32, i32
  }
  func.func @transform_2(%arg0: i32) -> (i32, i32) {
    %c0_i32 = arith.constant 0 : i32
    %c0_i32_0 = arith.constant 0 : i32
    %c0_i32_1 = arith.constant 0 : i32
    return %c0_i32, %c0_i32_0 : i32, i32
  }
  func.func @transform_3(%arg0: i32) -> (i32, i32) {
    %c0_i32 = arith.constant 0 : i32
    %c0_i32_0 = arith.constant 0 : i32
    %c0_i32_1 = arith.constant 0 : i32
    return %c0_i32, %c0_i32_0 : i32, i32
  }
}

</mosaic_0001>

<bundles_post_ra>
// kernel: tpu_custom_call.1
= control target key start
LH: loop header
LB: loop body
LE: loop exit
PB: predicated region body
PF: predicated region fallthrough
CT: control target
= control target key end

     0   :  { %9 = vsyncpa [#allocation5], 0  ;;  %s687_s0 = inlined_call_operand.vmem [shape: f32[80,10], index: 0, kind: input, shape index: {}]   ;;  %s688_s1 = inlined_call_operand.vmem [shape: s32[80,1], index: 1, kind: input, shape index: {}]   ;;  %s689_s2 = inlined_call_operand.hbm [shape: f32[1,10], index: 2, kind: output, shape index: {0}]   ;;  %s690_s3 = inlined_call_operand.hbm [shape: f32[1,10], index: 3, kind: output, shape index: {1}]  }
   0x1   :  { %10 = vsyncpa [#allocation7], 0  ;;  %s612_s12 = smov 0  }
   0x2 LB: > { %s618_s13 = sadd.s32 4294967295, %s584_s12   ;;  %p466_p0 = scmp.ge.s32.totalorder %s584_s12, 1  ;;  %s584_s12 = sphi %s612_s12, %s16_s12  }
   0x3   : > { %p160_p1 = scmp.lt.s32.totalorder %s584_s12, 4 }
   0x5   : > { %p161_p2 = pnand %p466_p0, %p160_p1 }
   0x6   : > { %s467_s14 = sshll.u32 (!%p161_p2), %s618_s13, 2  ;;  %p471_p4 = scmp.ne.s32.totalorder (!%p161_p2), %s618_s13, 0 }
   0x7   : > { %164 = sbr.rel (%p161_p2) target bundleno = 425 (0x1a9), region = 28  ;;  %p197_p3 = scmp.lt.s32.totalorder (!%p161_p2), %s467_s14, 9 }
   0xc   : > { %s694_s14 = smov (!%p197_p3, %s467_s14), 9  ;;  %223 = sbr.rel (%p471_p4) target bundleno = 20 (0x14), region = 32 }
   0xd   : > { %s468_s15 = sshll.u32 %s694_s14, 3 }
   0xe   : > { %s626_s18 = scalar_lea.vmem %s687_s0, %s468_s15  ;;  %s214_s21 = scalar_lea.vmem %s688_s1, %s468_s15 }
  0x11   : > { %v586_v0 = vmov 0.0  }
  0x12   : > { %224 = vst [vmem:[#allocation2] sm:$0x1] %v586_v0 }
  0x13   : > { %225 = vst [vmem:[#allocation3] sm:$0x1] %v586_v0 }
  0x14 PF: > { %v233_v1 = vld [vmem:[%s214_s21 + $0x18] sm:$0xff]  ;;  %v231_v2 = vld [vmem:[%s214_s21 + $0x8] sm:$0xff]  ;;  %v587_v3 = vmov 0   ;;  %v232_v4 = vld [vmem:[%s214_s21 + $0x10] sm:$0xff]  ;;  %v235_v6 = vlaneseq  ;;  %s472_s22 = sshll.u32 %s618_s13, 5  ;;  %v588_v19 = vmov 0.0  }
  0x15   : > { %513 = vset.pattern.permute.xlu1 %v587_v3  ;;  %512 = vset.pattern.permute.xlu0 %v587_v3  ;;  %v230_v5 = vld [vmem:[%s214_s21] sm:$0xff]  ;;  %v240_v10 = vstv %s472_s22  ;;  %v227_v17 = vld [vmem:[%s626_s18 + $0x8] sm:$0xff]  ;;  %v229_v18 = vld [vmem:[%s626_s18 + $0x18] sm:$0xff]  ;;  %v589_v27 = vmov 1.0   ;;  %vm279_vm6 = vcmask 80896   ;;  %vm317_vm13 = vcmask 261120  }
  0x16   : > { %261 = vperm.xlu0 %512, %v233_v1   ;;  %255 = vperm.xlu1 %513, %v231_v2   ;;  %v236_v7 = vshrl.u32 %v235_v6, 7  ;;  %v250_v13 = vand.u32 127, %v235_v6  ;;  %v228_v35 = vld [vmem:[%s626_s18 + $0x10] sm:$0xff]  ;;  %v226_v37 = vld [vmem:[%s626_s18] sm:$0xff]  ;;  %p479_p5 = scmp.ne.s32.totalorder %s618_s13, 2 }
  0x18   : > { %v237_v8 = vadd.s32 8, %v236_v7  ;;  %v239_v9 = vadd.s32 24, %v236_v7  ;;  %v238_v14 = vadd.s32 16, %v236_v7  ;;  %v241_v28 = vadd.s32 %v240_v10, %v236_v7 }
  0x19   : > { %v343_v3 = vld [vmem:[#allocation2] sm:$0x1] }
  0x1a   : > { %v633_v11 = vadd.s32 %v240_v10, %v237_v8  ;;  %v244_v12 = vadd.s32 %v240_v10, %v239_v9  ;;  %v243_v24 = vadd.s32 %v240_v10, %v238_v14  ;;  %vm245_vm8 = vcmp.lt.s32.totalorder %v241_v28, 80  ;;  %v316_v0 = vld [vmem:[#allocation3] sm:$0x1] }
  0x1c   : > { %vm246_vm0 = vcmp.lt.s32.totalorder %v633_v11, 80  ;;  %vm248_vm1 = vcmp.lt.s32.totalorder %v244_v12, 80  ;;  %vm247_vm7 = vcmp.lt.s32.totalorder %v243_v24, 80 }
  0x1e   : > { %258 = vperm.xlu0 %512, %v232_v4   ;;  %252 = vperm.xlu1 %513, %v230_v5  }
  0x88   : > { %v262_v15 = vpop.permute.xlu0 %261  ;;  %v256_v16 = vpop.permute.xlu1 %255 }
  0x89   : > { %vm266_vm2 = vcmp.eq.s32.totalorder %v250_v13, %v262_v15  ;;  %vm264_vm3 = vcmp.eq.s32.totalorder %v250_v13, %v256_v16 }
  0x8a   : > { %v270_v20 = vsel %vm266_vm2, 1.0, %v588_v19  ;;  %v268_v21 = vsel %vm264_vm3, 1.0, %v588_v19  ;;  %vm640_vm4 = vmand %vm264_vm3, %vm246_vm0 }
  0x8b   : > { %v272_v23 = vsub.f32 %v227_v17, %v268_v21  ;;  %vm311_vm5 = vmand %vm266_vm2, %vm248_vm1  ;;  %v274_v25 = vsub.f32 %v229_v18, %v270_v20  ;;  %v313_v26 = vsel %vm640_vm4, 1.0, %v588_v19 }
  0x8c   : > { %473 = vmatpush.msk.msra.mxu0 %vm311_vm5, %v589_v27  ;;  %v315_v29 = vsel %vm311_vm5, 1.0, %v588_v19 }
  0x8d   : > { %v278_v30 = vmul.f32 %v274_v25, %v274_v25  ;;  %v276_v31 = vmul.f32 %v272_v23, %v272_v23 }
  0x8f   : > { %v289_v32 = vsel %vm279_vm6, %v278_v30, 0.0  ;;  %v283_v33 = vsel %vm279_vm6, %v276_v31, 0.0 }
  0x90   : > { %v259_v34 = vpop.permute.xlu0 %258  ;;  %v253_v36 = vpop.permute.xlu1 %252  ;;  %290 = vadd.xlane.f32.xlu2 %v289_v32  ;;  %284 = vadd.xlane.f32.xlu0 %v283_v33 }
  0x91   : > { %vm265_vm9 = vcmp.eq.s32.totalorder %v250_v13, %v259_v34  ;;  %vm263_vm10 = vcmp.eq.s32.totalorder %v250_v13, %v253_v36 }
  0x92   : > { %v269_v38 = vsel %vm265_vm9, 1.0, %v588_v19  ;;  %vm310_vm11 = vmand %vm265_vm9, %vm247_vm7  ;;  %v267_v39 = vsel %vm263_vm10, 1.0, %v588_v19 }
  0x93   : > { %v273_v40 = vsub.f32 %v228_v35, %v269_v38  ;;  %v271_v41 = vsub.f32 %v226_v37, %v267_v39  ;;  %vm308_vm12 = vmand %vm263_vm10, %vm245_vm8  ;;  %474 = vmatpush.msk.msra.mxu0 %vm310_vm11, %v589_v27  ;;  %v314_v42 = vsel %vm310_vm11, 1.0, %v588_v19 }
  0x94   : > { %v312_v43 = vsel %vm308_vm12, 1.0, %v588_v19 }
  0x95   : > { %475 = vmatpush.msk.msra.mxu0 %vm640_vm4, %v589_v27  ;;  %v277_v44 = vmul.f32 %v273_v40, %v273_v40  ;;  %v275_v45 = vmul.f32 %v271_v41, %v271_v41 }
  0x97   : > { %476 = vmatpush.msk.msra.mxu0 %vm308_vm12, %v589_v27  ;;  %v286_v46 = vsel %vm279_vm6, %v277_v44, 0.0  ;;  %v280_v47 = vsel %vm279_vm6, %v275_v45, 0.0 }
  0x98   : > { %287 = vadd.xlane.f32.xlu2 %v286_v46  ;;  %281 = vadd.xlane.f32.xlu1 %v280_v47 }
  0x99   : > { %477 = vmatmul.msk.f32.vlgmr.msra.gmra.mxu0 %vm317_vm13, %v589_v27 }
 0x103   : > { %v291_v48 = vpop.xlane.xlu2 %290  ;;  %v285_v51 = vpop.xlane.xlu0 %284 }
 0x104   : > { %v295_v49 = vmul.f32 0.1, %v291_v48  ;;  %v293_v53 = vmul.f32 0.1, %v285_v51 }
 0x106   : > { %v299_v50 = vsel %vm248_vm1, %v295_v49, 0.0  ;;  %v297_v58 = vsel %vm246_vm0, %v293_v53, 0.0 }
 0x107   : > { %v347_v52 = vmul.f32 %v315_v29, %v299_v50  ;;  %v345_v62 = vmul.f32 %v313_v26, %v297_v58 }
 0x109   : > { %360 = vmatpush.msra.mxu1 %v347_v52 }
 0x10b   : > { %v288_v54 = vpop.xlane.xlu2 %287  ;;  %v282_v55 = vpop.xlane.xlu1 %281 }
 0x10c   : > { %v294_v56 = vmul.f32 0.1, %v288_v54  ;;  %v292_v57 = vmul.f32 0.1, %v282_v55 }
 0x10e   : > { %v298_v59 = vsel %vm247_vm7, %v294_v56, 0.0  ;;  %v296_v61 = vsel %vm245_vm8, %v292_v57, 0.0 }
 0x10f   : > { %v346_v60 = vmul.f32 %v314_v42, %v298_v59  ;;  %v344_v63 = vmul.f32 %v312_v43, %v296_v61 }
 0x111   : > { %361 = vmatpush.msra.mxu1 %v346_v60 }
 0x113   : > { %362 = vmatpush.msra.mxu1 %v345_v62 }
 0x115   : > { %363 = vmatpush.msra.mxu1 %v344_v63 }
 0x116   : > { %478 = vmatmul.msk.f32.vlgmr.msra.gmra.mxu1 %vm317_vm13, %v589_v27  ;;  %v338_v1 = vpop.f32.mrf.mxu0 }
 0x117   : > { %v341_v2 = vadd.f32 %v338_v1, %v316_v0 }
 0x119   : > { %342 = vst [vmem:[#allocation3] sm:$0x1] %v341_v2 }
 0x192   : > { %373 = sbr.rel (%p479_p5) target bundleno = 415 (0x19f), region = 36 }
 0x193   : > { %v365_v4 = vpop.f32.mrf.mxu1 }
 0x194   : > { %v368_v5 = vadd.f32 %v365_v4, %v343_v3 }
 0x196   : > { %369 = vst [vmem:[#allocation2] sm:$0x1] %v368_v5 }
 0x197   : > { %vm375_vm14 = vcmask 73728   ;;  %v377_v7 = vld [vmem:[#allocation3] sm:$0x1] }
 0x198   : > { %378 = vst.msk [vmem:[#allocation6] sm:$0x1] %vm375_vm14, %v377_v7 }
 0x19d   : > { %v374_v6 = vld [vmem:[#allocation2] sm:$0x1] }
 0x19e   : > { %376 = vst.msk [vmem:[#allocation4] sm:$0x1] %vm375_vm14, %v374_v6 }
 0x19f PF: > { %p494_p6 = scmp.eq.s32.totalorder %s618_s13, 2  ;;  %s590_s23 = smov [#allocation4]  }
 0x1a0   : > { %s385_s24 = sshll.u32 %s590_s23, 4  ;;  %s387_s27 = sshll.u32 %s689_s2, 4  ;;  %s386_s24 = int_to_ptr.vmem [resolvable:$true] %s385_s24  ;;  %s388_s27 = int_to_ptr.hbm [resolvable:$true] %s387_s27 }
 0x1a1   : > { %487 = dma.vmem_to_hbm [thread:$0]  (%p494_p6), %s386_s24, 16, %s388_s27, [#allocation5]  }
 0x1a2   : > { %s399_s30 = sshll.u32 %s690_s3, 4  ;;  %s591_s4 = smov [#allocation6]   ;;  %s400_s30 = int_to_ptr.hbm [resolvable:$true] %s399_s30 }
 0x1a3   : > { %s397_s5 = sshll.u32 %s591_s4, 4  ;;  %s398_s5 = int_to_ptr.vmem [resolvable:$true] %s397_s5 }
 0x1a4   : > { %489 = dma.vmem_to_hbm [thread:$0]  (%p494_p6), %s398_s5, 16, %s400_s30, [#allocation7]  }
 0x1a5   : > { %575 = dma.done.wait (%p494_p6), [#allocation5], 16  }
 0x1a6   : > { %577 = vsyncadd (%p494_p6), [#allocation5], 4294967280 }
 0x1a7   : > { %579 = dma.done.wait (%p494_p6), [#allocation7], 16  }
 0x1a8   : > { %581 = vsyncadd (%p494_p6), [#allocation7], 4294967280 }
 0x1a9 PF: > { %s16_s12 = sadd.s32 1, %s584_s12  }
 0x1aa   : > { %p13_p7 = scmp.ge.s32.totalorder %s16_s12, 5  }
 0x1ac   :  { %15 = sbr.rel (!%p13_p7) target bundleno = 2 (0x2), region = 74 }
 0x1b1   :  { %418 = vsyncpa [#allocation5], 1 }
 0x1b2   :  { %420 = vsyncpa [#allocation5 + $0x1], 1 }
 0x1b3   :  { %421 = vsyncpa [#allocation7], 1 }

</bundles_post_ra>
